<compile_context>
chip_gen: v5e
topology: v5e:2x2
jax: 0.10.0
libtpu: 0.0.40
codegen_flags: <defaults>
</compile_context>

<pallas_src>
import functools

import jax
import jax.numpy as jnp
import numpy as np
from jax.experimental import pallas as pl
from jax.experimental.pallas import tpu as pltpu


# ----------------------------- module config (from __init__) -----------------
BASE_SIZES = [8, 16, 32, 64, 128]
STRIDES = [(s, s) for s in BASE_SIZES]
OCTAVE_BASE_SCALE = 3
SCALES_PER_OCTAVE = 1
SCALES = np.array(
    [2.0 ** (i / SCALES_PER_OCTAVE) for i in range(SCALES_PER_OCTAVE)]
) * OCTAVE_BASE_SCALE                      # -> [3.0]
RATIOS = np.array([0.5, 1.0, 2.0])
CENTERS = [(s / 2.0, s / 2.0) for s in BASE_SIZES]
NUM_BASE = len(RATIOS) * len(SCALES)       # A = 3 anchors per grid position
LANE = 128


def _base_anchor_values(level_idx):
    """(A, 4) base anchors for one level (module state; __init__ in PyTorch)."""
    base_size = float(BASE_SIZES[level_idx])
    xc, yc = CENTERS[level_idx]
    h_ratios = np.sqrt(RATIOS)
    w_ratios = 1.0 / h_ratios
    # scale_major = True
    ws = (base_size * w_ratios[:, None] * SCALES[None, :]).reshape(-1)
    hs = (base_size * h_ratios[:, None] * SCALES[None, :]).reshape(-1)
    return np.stack(
        [xc - 0.5 * ws, yc - 0.5 * hs, xc + 0.5 * ws, yc + 0.5 * hs], axis=-1
    )  # (A, 4)


def _round_up(x, m):
    return (x + m - 1) // m * m


# --------------------------------- Pallas kernel ------------------------------
def _anchor_shift_kernel(base_ref, out_ref, *, tiles, max_w, rows):
    """base_ref / out_ref: (rows, TOTAL_LANES).

    Lane layout per level: L = p * A + a (p = grid position, a = base anchor).
    Row c in {0,1,2,3} holds box coordinate c; rows >= 4 are sublane padding.
    base_ref already carries base_anchor[a, c] per lane, so the kernel only
    builds the shift grid (x for even rows, y for odd rows) and adds it.
    Padded lanes / rows hold garbage and are sliced off outside the kernel.
    """
    row = jax.lax.broadcasted_iota(jnp.int32, (rows, 1), 0)
    is_x = (row % 2) == 0                      # rows {0,2} -> x, {1,3} -> y
    # Single hoisted lane iota, sliced per tile below (no per-level re-emit).
    lane = jax.lax.broadcasted_iota(jnp.int32, (1, max_w), 1).astype(jnp.float32)
    third = 1.0 / 3.0                          # 1 / A, used via exact floor trick

    for t_off, t_w, sub in tiles:
        L = lane[:, :t_w]
        los = [s[0] for s in sub]

        def sel(vals):
            # Per-lane constant: plain scalar for single-level tiles, otherwise
            # a short where-chain over the in-tile level boundaries.
            if len(vals) == 1:
                return float(vals[0])
            out = jnp.full(L.shape, float(vals[0]), jnp.float32)
            for lo, v in zip(los[1:], vals[1:]):
                out = jnp.where(L >= float(lo), jnp.float32(v), out)
            return out

        lane_lo = sel([s[0] for s in sub])     # level start lane within tile
        fw = sel([s[1] for s in sub])          # feature-map width
        fw_inv = sel([1.0 / s[1] for s in sub])
        sw = sel([s[2] for s in sub])          # stride_w
        sh = sel([s[3] for s in sub])          # stride_h

        # p = (L - lane_lo) // A  -- exact for these magnitudes, no vector idiv.
        p = jnp.floor((L - lane_lo + 0.5) * third)
        # grid_y = p // fw, grid_x = p % fw via exact reciprocal-multiply floor.
        gy = jnp.floor((p + 0.5) * fw_inv)
        gx = p - gy * fw
        shift = jnp.where(is_x, gx * sw, gy * sh)          # (rows, t_w)

        out_ref[:, t_off:t_off + t_w] = (
            base_ref[:, t_off:t_off + t_w] + shift
        ).astype(out_ref.dtype)


# --------------------------------- planner / wrapper ---------------------------
def _plan(featmap_sizes):
    """Pack levels into 128-lane-aligned tiles; small levels share a tile."""
    assert len(featmap_sizes) == len(STRIDES)
    counts = [fh * fw * NUM_BASE for fh, fw in featmap_sizes]
    tiles = []          # [tile_off, tile_width, used, [(lane_lo, fw, sw, sh), ...]]
    level_offs = []
    for i, ((fh, fw), cnt) in enumerate(zip(featmap_sizes, counts)):
        sw, sh = STRIDES[i]
        if tiles and tiles[-1][2] + cnt <= tiles[-1][1]:
            t = tiles[-1]                                   # fits in padding: fold in
            level_offs.append(t[0] + t[2])
            t[3].append((t[2], int(fw), float(sw), float(sh)))
            t[2] += cnt
        else:
            off = tiles[-1][0] + tiles[-1][1] if tiles else 0
            tiles.append([off, _round_up(cnt, LANE), cnt,
                          [(0, int(fw), float(sw), float(sh))]])
            level_offs.append(off)
    total = tiles[-1][0] + tiles[-1][1]
    ktiles = tuple((t[0], t[1], tuple(t[3])) for t in tiles)
    return ktiles, tuple(level_offs), tuple(counts), total


@functools.lru_cache(maxsize=None)
def _anchors_for(featmap_key, dtype_name):
    """Build, run once and cache the per-level anchor arrays (pure constant)."""
    out_dtype = np.dtype(dtype_name)
    rows = 8 if out_dtype.itemsize >= 4 else 16   # full f32 / 16-bit sublane tiles
    tiles, level_offs, counts, total = _plan(featmap_key)
    max_w = max(t[1] for t in tiles)

    # Bake the base-anchor pattern (module state) as one lane-dense f32 input.
    base_pattern = np.zeros((rows, total), np.float32)
    for i, (fh, fw) in enumerate(featmap_key):
        base = _base_anchor_values(i).astype(np.float32)        # (A, 4)
        off, cnt = level_offs[i], counts[i]
        base_pattern[:4, off:off + cnt] = np.tile(base.T, (1, fh * fw))

    kernel = functools.partial(_anchor_shift_kernel,
                               tiles=tiles, max_w=max_w, rows=rows)
    call = pl.pallas_call(
        kernel,
        out_shape=jax.ShapeDtypeStruct((rows, total), out_dtype),
        in_specs=[pl.BlockSpec(memory_space=pltpu.MemorySpace.VMEM)],
        out_specs=pl.BlockSpec(memory_space=pltpu.MemorySpace.VMEM),
    )

    def fwd(bp):
        slab = call(bp)                                         # (rows, total)
        # One slice + one transpose per level -> PyTorch (P*A, 4) layout.
        # TODO(synk): the (P*A, 4) layout is lane-hostile on TPU; it is produced
        # by XLA glue here (once, then memoized) rather than inside the kernel.
        return tuple(slab[:4, off:off + cnt].T
                     for off, cnt in zip(level_offs, counts))

    outs = jax.jit(fwd)(jnp.asarray(base_pattern))
    return tuple(jax.block_until_ready(o) for o in outs)


def anchor_generator_forward(featmap_sizes, dtype=jnp.float32):
    """Equivalent of AnchorGenerator.forward(featmap_sizes, dtype, device)."""
    key = tuple((int(h), int(w)) for h, w in featmap_sizes)
    return list(_anchors_for(key, np.dtype(dtype).name))


# ------------------------------ pure-JAX reference ----------------------------
def _ref_level(featmap_size, level_idx, dtype=jnp.float32):
    feat_h, feat_w = featmap_size
    stride_w, stride_h = STRIDES[level_idx]
    base = jnp.asarray(_base_anchor_values(level_idx), dtype=dtype)
    sx = jnp.arange(feat_w, dtype=dtype) * stride_w
    sy = jnp.arange(feat_h, dtype=dtype) * stride_h
    xx = jnp.tile(sx, feat_h)
    yy = jnp.repeat(sy, feat_w)
    shifts = jnp.stack([xx, yy, xx, yy], axis=-1)           # (P, 4)
    return (base[None, :, :] + shifts[:, None, :]).reshape(-1, 4)


# ------------------------------------ main ------------------------------------
if __name__ == "__main__":
    key = jax.random.PRNGKey(0)

    # Small synthetic backbone feature maps (NCHW); only their spatial sizes
    # feed the anchor generator, mirroring real usage.
    img_hw = 128
    batch, channels = 2, 4
    keys = jax.random.split(key, len(BASE_SIZES))
    feats = [
        jax.random.normal(k, (batch, channels, img_hw // s, img_hw // s),
                          dtype=jnp.float32)
        for k, s in zip(keys, BASE_SIZES)
    ]
    featmap_sizes = [(f.shape[2], f.shape[3]) for f in feats]
    # -> [(16,16), (8,8), (4,4), (2,2), (1,1)]

    anchors = anchor_generator_forward(featmap_sizes, dtype=jnp.float32)
    anchors = [jax.block_until_ready(a) for a in anchors]

    # Second call exercises the memoized path (returns the cached arrays).
    anchors2 = anchor_generator_forward(featmap_sizes, dtype=jnp.float32)

    # verify against pure-JAX reference
    for i, a in enumerate(anchors):
        fh, fw = featmap_sizes[i]
        ref = _ref_level((fh, fw), i)
        assert a.shape == (fh * fw * NUM_BASE, 4), a.shape
        np.testing.assert_allclose(np.asarray(a), np.asarray(ref),
                                   rtol=1e-6, atol=1e-4)
        np.testing.assert_array_equal(np.asarray(anchors2[i]), np.asarray(a))

    print("KERNEL_OK")
</pallas_src>

<mosaic_0001>
module attributes {stable_mosaic.version = 11 : i64} {
  func.func @_anchor_shift_kernel(%arg0: memref<8x1024xf32, #tpu.memory_space<vmem>>, %arg1: memref<8x1024xf32, #tpu.memory_space<vmem>>) attributes {dimension_semantics = [], scalar_prefetch = 0 : i64, scratch_operands = 0 : i64, tpu.core_type = #tpu.core_type<tc>} {
    %0 = tpu.iota {dimensions = array<i32: 0>} : vector<8x1xi32>
    %c2_i32 = arith.constant 2 : i32
    %c0_i32 = arith.constant 0 : i32
    %1 = arith.cmpi eq, %c2_i32, %c0_i32 : i32
    %c1_i32 = arith.constant 1 : i32
    %2 = arith.select %1, %c1_i32, %c2_i32 : i32
    %3 = vector.broadcast %2 : i32 to vector<8x1xi32>
    %4 = arith.remsi %0, %3 : vector<8x1xi32>
    %c0_i32_0 = arith.constant 0 : i32
    %5 = vector.broadcast %c0_i32_0 : i32 to vector<8x1xi32>
    %6 = arith.cmpi ne, %4, %5 : vector<8x1xi32>
    %c0_i32_1 = arith.constant 0 : i32
    %7 = vector.broadcast %c0_i32_1 : i32 to vector<8x1xi32>
    %8 = arith.cmpi slt, %4, %7 : vector<8x1xi32>
    %c0_i32_2 = arith.constant 0 : i32
    %9 = arith.cmpi slt, %2, %c0_i32_2 : i32
    %10 = vector.broadcast %9 : i1 to vector<8x1xi1>
    %11 = vector.broadcast %10 : vector<8x1xi1> to vector<8x1xi1>
    %12 = arith.xori %8, %11 : vector<8x1xi1>
    %13 = arith.andi %12, %6 : vector<8x1xi1>
    %14 = vector.broadcast %2 : i32 to vector<8x1xi32>
    %15 = arith.addi %4, %14 : vector<8x1xi32>
    %16 = arith.select %13, %15, %4 : vector<8x1xi1>, vector<8x1xi32>
    %c0_i32_3 = arith.constant 0 : i32
    %17 = vector.broadcast %c0_i32_3 : i32 to vector<8x1xi32>
    %18 = arith.cmpi eq, %16, %17 : vector<8x1xi32>
    %19 = tpu.iota {dimensions = array<i32: 1>} : vector<1x768xi32>
    %20 = arith.sitofp %19 : vector<1x768xi32> to vector<1x768xf32>
    %cst = arith.constant 0.000000e+00 : f32
    %21 = vector.broadcast %cst : f32 to vector<1x768xf32>
    %22 = arith.subf %20, %21 : vector<1x768xf32>
    %cst_4 = arith.constant 5.000000e-01 : f32
    %23 = vector.broadcast %cst_4 : f32 to vector<1x768xf32>
    %24 = arith.addf %22, %23 : vector<1x768xf32>
    %cst_5 = arith.constant 0.333333343 : f32
    %25 = vector.broadcast %cst_5 : f32 to vector<1x768xf32>
    %26 = arith.mulf %24, %25 : vector<1x768xf32>
    %27 = math.floor %26 : vector<1x768xf32>
    %cst_6 = arith.constant 5.000000e-01 : f32
    %28 = vector.broadcast %cst_6 : f32 to vector<1x768xf32>
    %29 = arith.addf %27, %28 : vector<1x768xf32>
    %cst_7 = arith.constant 6.250000e-02 : f32
    %30 = vector.broadcast %cst_7 : f32 to vector<1x768xf32>
    %31 = arith.mulf %29, %30 : vector<1x768xf32>
    %32 = math.floor %31 : vector<1x768xf32>
    %cst_8 = arith.constant 1.600000e+01 : f32
    %33 = vector.broadcast %cst_8 : f32 to vector<1x768xf32>
    %34 = arith.mulf %32, %33 : vector<1x768xf32>
    %35 = arith.subf %27, %34 : vector<1x768xf32>
    %cst_9 = arith.constant 8.000000e+00 : f32
    %36 = vector.broadcast %cst_9 : f32 to vector<1x768xf32>
    %37 = arith.mulf %35, %36 : vector<1x768xf32>
    %cst_10 = arith.constant 8.000000e+00 : f32
    %38 = vector.broadcast %cst_10 : f32 to vector<1x768xf32>
    %39 = arith.mulf %32, %38 : vector<1x768xf32>
    %40 = vector.shape_cast %18 : vector<8x1xi1> to vector<8x1xi1>
    %41 = vector.broadcast %40 : vector<8x1xi1> to vector<8x768xi1>
    %42 = vector.shape_cast %37 : vector<1x768xf32> to vector<1x768xf32>
    %43 = vector.broadcast %42 : vector<1x768xf32> to vector<8x768xf32>
    %44 = vector.shape_cast %39 : vector<1x768xf32> to vector<1x768xf32>
    %45 = vector.broadcast %44 : vector<1x768xf32> to vector<8x768xf32>
    %46 = arith.select %41, %43, %45 : vector<8x768xi1>, vector<8x768xf32>
    %c0 = arith.constant 0 : index
    %c0_11 = arith.constant 0 : index
    %47 = vector.load %arg0[%c0, %c0_11] : memref<8x1024xf32, #tpu.memory_space<vmem>>, vector<8x768xf32>
    %48 = arith.addf %47, %46 : vector<8x768xf32>
    %c0_12 = arith.constant 0 : index
    %c0_13 = arith.constant 0 : index
    %49 = vector.load %arg1[%c0_12, %c0_13] : memref<8x1024xf32, #tpu.memory_space<vmem>>, vector<8x768xf32>
    tpu.vector_store %arg1[%c0_12, %c0_13], %48 {strides = array<i32>} : memref<8x1024xf32, #tpu.memory_space<vmem>>, vector<8x768xf32>,
    %50 = vector.extract_strided_slice %20 {offsets = [0, 0], sizes = [1, 256], strides = [1, 1]} : vector<1x768xf32> to vector<1x256xf32>
    %cst_14 = arith.constant 0.000000e+00 : f32
    %51 = vector.broadcast %cst_14 : f32 to vector<1x256xf32>
    %cst_15 = arith.constant 1.920000e+02 : f32
    %52 = vector.broadcast %cst_15 : f32 to vector<1x256xf32>
    %53 = arith.cmpf oge, %50, %52 : vector<1x256xf32>
    %cst_16 = arith.constant 1.920000e+02 : f32
    %54 = vector.broadcast %cst_16 : f32 to vector<1x256xf32>
    %55 = arith.select %53, %54, %51 : vector<1x256xi1>, vector<1x256xf32>
    %cst_17 = arith.constant 2.400000e+02 : f32
    %56 = vector.broadcast %cst_17 : f32 to vector<1x256xf32>
    %57 = arith.cmpf oge, %50, %56 : vector<1x256xf32>
    %cst_18 = arith.constant 2.400000e+02 : f32
    %58 = vector.broadcast %cst_18 : f32 to vector<1x256xf32>
    %59 = arith.select %57, %58, %55 : vector<1x256xi1>, vector<1x256xf32>
    %cst_19 = arith.constant 2.520000e+02 : f32
    %60 = vector.broadcast %cst_19 : f32 to vector<1x256xf32>
    %61 = arith.cmpf oge, %50, %60 : vector<1x256xf32>
    %cst_20 = arith.constant 2.520000e+02 : f32
    %62 = vector.broadcast %cst_20 : f32 to vector<1x256xf32>
    %63 = arith.select %61, %62, %59 : vector<1x256xi1>, vector<1x256xf32>
    %cst_21 = arith.constant 8.000000e+00 : f32
    %64 = vector.broadcast %cst_21 : f32 to vector<1x256xf32>
    %cst_22 = arith.constant 1.920000e+02 : f32
    %65 = vector.broadcast %cst_22 : f32 to vector<1x256xf32>
    %66 = arith.cmpf oge, %50, %65 : vector<1x256xf32>
    %cst_23 = arith.constant 4.000000e+00 : f32
    %67 = vector.broadcast %cst_23 : f32 to vector<1x256xf32>
    %68 = arith.select %66, %67, %64 : vector<1x256xi1>, vector<1x256xf32>
    %cst_24 = arith.constant 2.400000e+02 : f32
    %69 = vector.broadcast %cst_24 : f32 to vector<1x256xf32>
    %70 = arith.cmpf oge, %50, %69 : vector<1x256xf32>
    %cst_25 = arith.constant 2.000000e+00 : f32
    %71 = vector.broadcast %cst_25 : f32 to vector<1x256xf32>
    %72 = arith.select %70, %71, %68 : vector<1x256xi1>, vector<1x256xf32>
    %cst_26 = arith.constant 2.520000e+02 : f32
    %73 = vector.broadcast %cst_26 : f32 to vector<1x256xf32>
    %74 = arith.cmpf oge, %50, %73 : vector<1x256xf32>
    %cst_27 = arith.constant 1.000000e+00 : f32
    %75 = vector.broadcast %cst_27 : f32 to vector<1x256xf32>
    %76 = arith.select %74, %75, %72 : vector<1x256xi1>, vector<1x256xf32>
    %cst_28 = arith.constant 1.250000e-01 : f32
    %77 = vector.broadcast %cst_28 : f32 to vector<1x256xf32>
    %cst_29 = arith.constant 1.920000e+02 : f32
    %78 = vector.broadcast %cst_29 : f32 to vector<1x256xf32>
    %79 = arith.cmpf oge, %50, %78 : vector<1x256xf32>
    %cst_30 = arith.constant 2.500000e-01 : f32
    %80 = vector.broadcast %cst_30 : f32 to vector<1x256xf32>
    %81 = arith.select %79, %80, %77 : vector<1x256xi1>, vector<1x256xf32>
    %cst_31 = arith.constant 2.400000e+02 : f32
    %82 = vector.broadcast %cst_31 : f32 to vector<1x256xf32>
    %83 = arith.cmpf oge, %50, %82 : vector<1x256xf32>
    %cst_32 = arith.constant 5.000000e-01 : f32
    %84 = vector.broadcast %cst_32 : f32 to vector<1x256xf32>
    %85 = arith.select %83, %84, %81 : vector<1x256xi1>, vector<1x256xf32>
    %cst_33 = arith.constant 2.520000e+02 : f32
    %86 = vector.broadcast %cst_33 : f32 to vector<1x256xf32>
    %87 = arith.cmpf oge, %50, %86 : vector<1x256xf32>
    %cst_34 = arith.constant 1.000000e+00 : f32
    %88 = vector.broadcast %cst_34 : f32 to vector<1x256xf32>
    %89 = arith.select %87, %88, %85 : vector<1x256xi1>, vector<1x256xf32>
    %cst_35 = arith.constant 1.600000e+01 : f32
    %90 = vector.broadcast %cst_35 : f32 to vector<1x256xf32>
    %cst_36 = arith.constant 1.920000e+02 : f32
    %91 = vector.broadcast %cst_36 : f32 to vector<1x256xf32>
    %92 = arith.cmpf oge, %50, %91 : vector<1x256xf32>
    %cst_37 = arith.constant 3.200000e+01 : f32
    %93 = vector.broadcast %cst_37 : f32 to vector<1x256xf32>
    %94 = arith.select %92, %93, %90 : vector<1x256xi1>, vector<1x256xf32>
    %cst_38 = arith.constant 2.400000e+02 : f32
    %95 = vector.broadcast %cst_38 : f32 to vector<1x256xf32>
    %96 = arith.cmpf oge, %50, %95 : vector<1x256xf32>
    %cst_39 = arith.constant 6.400000e+01 : f32
    %97 = vector.broadcast %cst_39 : f32 to vector<1x256xf32>
    %98 = arith.select %96, %97, %94 : vector<1x256xi1>, vector<1x256xf32>
    %cst_40 = arith.constant 2.520000e+02 : f32
    %99 = vector.broadcast %cst_40 : f32 to vector<1x256xf32>
    %100 = arith.cmpf oge, %50, %99 : vector<1x256xf32>
    %cst_41 = arith.constant 1.280000e+02 : f32
    %101 = vector.broadcast %cst_41 : f32 to vector<1x256xf32>
    %102 = arith.select %100, %101, %98 : vector<1x256xi1>, vector<1x256xf32>
    %cst_42 = arith.constant 1.600000e+01 : f32
    %103 = vector.broadcast %cst_42 : f32 to vector<1x256xf32>
    %cst_43 = arith.constant 1.920000e+02 : f32
    %104 = vector.broadcast %cst_43 : f32 to vector<1x256xf32>
    %105 = arith.cmpf oge, %50, %104 : vector<1x256xf32>
    %cst_44 = arith.constant 3.200000e+01 : f32
    %106 = vector.broadcast %cst_44 : f32 to vector<1x256xf32>
    %107 = arith.select %105, %106, %103 : vector<1x256xi1>, vector<1x256xf32>
    %cst_45 = arith.constant 2.400000e+02 : f32
    %108 = vector.broadcast %cst_45 : f32 to vector<1x256xf32>
    %109 = arith.cmpf oge, %50, %108 : vector<1x256xf32>
    %cst_46 = arith.constant 6.400000e+01 : f32
    %110 = vector.broadcast %cst_46 : f32 to vector<1x256xf32>
    %111 = arith.select %109, %110, %107 : vector<1x256xi1>, vector<1x256xf32>
    %cst_47 = arith.constant 2.520000e+02 : f32
    %112 = vector.broadcast %cst_47 : f32 to vector<1x256xf32>
    %113 = arith.cmpf oge, %50, %112 : vector<1x256xf32>
    %cst_48 = arith.constant 1.280000e+02 : f32
    %114 = vector.broadcast %cst_48 : f32 to vector<1x256xf32>
    %115 = arith.select %113, %114, %111 : vector<1x256xi1>, vector<1x256xf32>
    %116 = arith.subf %50, %63 : vector<1x256xf32>
    %cst_49 = arith.constant 5.000000e-01 : f32
    %117 = vector.broadcast %cst_49 : f32 to vector<1x256xf32>
    %118 = arith.addf %116, %117 : vector<1x256xf32>
    %cst_50 = arith.constant 0.333333343 : f32
    %119 = vector.broadcast %cst_50 : f32 to vector<1x256xf32>
    %120 = arith.mulf %118, %119 : vector<1x256xf32>
    %121 = math.floor %120 : vector<1x256xf32>
    %cst_51 = arith.constant 5.000000e-01 : f32
    %122 = vector.broadcast %cst_51 : f32 to vector<1x256xf32>
    %123 = arith.addf %121, %122 : vector<1x256xf32>
    %124 = arith.mulf %123, %89 : vector<1x256xf32>
    %125 = math.floor %124 : vector<1x256xf32>
    %126 = arith.mulf %125, %76 : vector<1x256xf32>
    %127 = arith.subf %121, %126 : vector<1x256xf32>
    %128 = arith.mulf %127, %102 : vector<1x256xf32>
    %129 = arith.mulf %125, %115 : vector<1x256xf32>
    %130 = vector.shape_cast %18 : vector<8x1xi1> to vector<8x1xi1>
    %131 = vector.broadcast %130 : vector<8x1xi1> to vector<8x256xi1>
    %132 = vector.shape_cast %128 : vector<1x256xf32> to vector<1x256xf32>
    %133 = vector.broadcast %132 : vector<1x256xf32> to vector<8x256xf32>
    %134 = vector.shape_cast %129 : vector<1x256xf32> to vector<1x256xf32>
    %135 = vector.broadcast %134 : vector<1x256xf32> to vector<8x256xf32>
    %136 = arith.select %131, %133, %135 : vector<8x256xi1>, vector<8x256xf32>
    %c0_52 = arith.constant 0 : index
    %c768 = arith.constant 768 : index
    %137 = vector.load %arg0[%c0_52, %c768] : memref<8x1024xf32, #tpu.memory_space<vmem>>, vector<8x256xf32>
    %138 = arith.addf %137, %136 : vector<8x256xf32>
    %c0_53 = arith.constant 0 : index
    %c768_54 = arith.constant 768 : index
    %139 = vector.load %arg1[%c0_53, %c768_54] : memref<8x1024xf32, #tpu.memory_space<vmem>>, vector<8x256xf32>
    tpu.vector_store %arg1[%c0_53, %c768_54], %138 {strides = array<i32>} : memref<8x1024xf32, #tpu.memory_space<vmem>>, vector<8x256xf32>,
    return
  }
}

</mosaic_0001>

<bundles_post_ra>
// kernel: fwd.1
= control target key start
LH: loop header
LB: loop body
LE: loop exit
PB: predicated region body
PF: predicated region fallthrough
CT: control target
= control target key end

     0   :  { %6 = vsyncpa [#allocation3], 0  ;;  %s232_s9 = smov [#allocation2]   ;;  %s358_s0 = inlined_call_operand.hbm [shape: f32[8,1024], index: 0, kind: input, shape index: {}]   ;;  %s359_s1 = inlined_call_operand.vmem [shape: f32[8,1024], index: 1, kind: output, shape index: {}]  }
   0x1   :  { %s12_s8 = sshll.u32 %s358_s0, 4  ;;  %s14_s10 = sshll.u32 %s232_s9, 4  ;;  %s13_s8 = int_to_ptr.hbm [resolvable:$true] %s12_s8  ;;  %s15_s10 = int_to_ptr.vmem [resolvable:$true] %s14_s10 }
   0x2   :  { %17 = dma.hbm_to_vmem [thread:$0]  %s13_s8, 1024, %s15_s10, [#allocation3]  }
   0x3   :  { %230 = dma.done.wait [#allocation3], 1024  }
   0x4   :  { %231 = vsyncadd [#allocation3], 4294966272  ;;  %v22_v0 = vlaneseq  ;;  %v233_v37 = vmov 0.0  }
   0x6   :  { %v38_v1 = vand.u32 127, %v22_v0  ;;  %v23_v17 = vshrl.u32 %v22_v0, 7 }
   0x8   :  { %v250_v2 = vcvt.s32.f32 %v38_v1  ;;  %v39_v3 = vadd.s32 128, %v38_v1  ;;  %v40_v4 = vadd.s32 256, %v38_v1  ;;  %v41_v5 = vadd.s32 384, %v38_v1 }
   0x9   :  { %v42_v6 = vadd.s32 512, %v38_v1  ;;  %v43_v7 = vadd.s32 640, %v38_v1  ;;  %v28_v30 = vand.u32 1, %v23_v17  ;;  %v118_v1 = vld [vmem:[#allocation2] sm:$0xff] }
   0xa   :  { %v50_v8 = vadd.f32 0.5, %v250_v2  ;;  %v253_v9 = vcvt.s32.f32 %v39_v3  ;;  %v46_v10 = vcvt.s32.f32 %v40_v4  ;;  %v47_v11 = vcvt.s32.f32 %v41_v5 }
   0xb   :  { %v48_v12 = vcvt.s32.f32 %v42_v6  ;;  %v49_v13 = vcvt.s32.f32 %v43_v7  ;;  %vm136_vm0 = vcmp.ge.f32.partialorder %v250_v2, 192.0  ;;  %vm140_vm1 = vcmp.ge.f32.partialorder %v250_v2, 240.0 }
   0xc   :  { %v56_v14 = vmul.f32 0.33333334, %v50_v8  ;;  %v51_v15 = vadd.f32 0.5, %v253_v9  ;;  %v52_v16 = vadd.f32 0.5, %v46_v10  ;;  %v53_v18 = vadd.f32 0.5, %v47_v11 }
   0xd   :  { %v54_v19 = vadd.f32 0.5, %v48_v12  ;;  %v55_v20 = vadd.f32 0.5, %v49_v13  ;;  %v138_v38 = vsel %vm136_vm0, 192.0, %v233_v37  ;;  %vm261_vm2 = vcmp.eq.s32.totalorder %v28_v30, 0  ;;  %v119_v13 = vld [vmem:[#allocation2 + $0x8] sm:$0xff] }
   0xe   :  { %v62_v21 = vfloor.f32 %v56_v14  ;;  %v57_v22 = vmul.f32 0.33333334, %v51_v15  ;;  %v58_v23 = vmul.f32 0.33333334, %v52_v16  ;;  %v59_v24 = vmul.f32 0.33333334, %v53_v18 }
   0xf   :  { %v60_v25 = vmul.f32 0.33333334, %v54_v19  ;;  %v61_v26 = vmul.f32 0.33333334, %v55_v20  ;;  %v142_v52 = vsel %vm140_vm1, 240.0, %v138_v38  ;;  %vm144_vm3 = vcmp.ge.f32.partialorder %v250_v2, 252.0 }
  0x10   :  { %v68_v27 = vadd.f32 0.5, %v62_v21  ;;  %v63_v28 = vfloor.f32 %v57_v22  ;;  %v64_v29 = vfloor.f32 %v58_v23  ;;  %v65_v31 = vfloor.f32 %v59_v24  ;;  %v120_v15 = vld [vmem:[#allocation2 + $0x10] sm:$0xff]  ;;  %v121_v18 = vld [vmem:[#allocation2 + $0x18] sm:$0xff]  ;;  %v122_v20 = vld [vmem:[#allocation2 + $0x20] sm:$0xff] }
  0x11   :  { %v66_v32 = vfloor.f32 %v60_v25  ;;  %v67_v33 = vfloor.f32 %v61_v26  ;;  %v146_v25 = vsel %vm144_vm3, 252.0, %v142_v52  ;;  %vm137_vm4 = vcmp.ge.f32.partialorder %v253_v9, 192.0 }
  0x12   :  { %v74_v34 = vmul.f32 0.0625, %v68_v27  ;;  %v69_v35 = vadd.f32 0.5, %v63_v28  ;;  %v70_v36 = vadd.f32 0.5, %v64_v29  ;;  %v71_v39 = vadd.f32 0.5, %v65_v31 }
  0x13   :  { %v72_v40 = vadd.f32 0.5, %v66_v32  ;;  %v73_v41 = vadd.f32 0.5, %v67_v33  ;;  %vm141_vm5 = vcmp.ge.f32.partialorder %v253_v9, 240.0  ;;  %vm145_vm6 = vcmp.ge.f32.partialorder %v253_v9, 252.0 }
  0x14   :  { %v80_v42 = vfloor.f32 %v74_v34  ;;  %v75_v43 = vmul.f32 0.0625, %v69_v35  ;;  %v76_v44 = vmul.f32 0.0625, %v70_v36  ;;  %v77_v46 = vmul.f32 0.0625, %v71_v39 }
  0x15   :  { %v78_v47 = vmul.f32 0.0625, %v72_v40  ;;  %v79_v48 = vmul.f32 0.0625, %v73_v41  ;;  %v166_v34 = vsub.f32 %v250_v2, %v146_v25  ;;  %v234_v36 = vmov 0.125  }
  0x16   :  { %v86_v49 = vmul.f32 16.0, %v80_v42  ;;  %v81_v50 = vfloor.f32 %v75_v43  ;;  %v82_v51 = vfloor.f32 %v76_v44  ;;  %v83_v53 = vfloor.f32 %v77_v46 }
  0x17   :  { %v84_v54 = vfloor.f32 %v78_v47  ;;  %v85_v55 = vfloor.f32 %v79_v48  ;;  %v104_v57 = vmul.f32 8.0, %v80_v42  ;;  %v154_v38 = vsel %vm136_vm0, 0.25, %v234_v36 }
  0x18   :  { %v92_v56 = vsub.f32 %v62_v21, %v86_v49  ;;  %v87_v58 = vmul.f32 16.0, %v81_v50  ;;  %v88_v59 = vmul.f32 16.0, %v82_v51  ;;  %v105_v60 = vmul.f32 8.0, %v81_v50 }
  0x19   :  { %v106_v61 = vmul.f32 8.0, %v82_v51  ;;  %v89_v62 = vmul.f32 16.0, %v83_v53  ;;  %v90_v63 = vmul.f32 16.0, %v84_v54  ;;  %v107_v5 = vmul.f32 8.0, %v83_v53 }
  0x1a   :  { %v98_v0 = vmul.f32 8.0, %v92_v56  ;;  %v93_v3 = vsub.f32 %v63_v28, %v87_v58  ;;  %v94_v4 = vsub.f32 %v64_v29, %v88_v59  ;;  %v108_v8 = vmul.f32 8.0, %v84_v54 }
  0x1b   :  { %v95_v6 = vsub.f32 %v65_v31, %v89_v62  ;;  %v96_v7 = vsub.f32 %v66_v32, %v90_v63  ;;  %v91_v10 = vmul.f32 16.0, %v85_v55  ;;  %v109_v24 = vmul.f32 8.0, %v85_v55 }
  0x1c   :  { %v112_v11 = vsel %vm261_vm2, %v98_v0, %v104_v57  ;;  %v99_v12 = vmul.f32 8.0, %v93_v3  ;;  %v100_v14 = vmul.f32 8.0, %v94_v4  ;;  %v139_v39 = vsel %vm137_vm4, 192.0, %v233_v37 }
  0x1d   :  { %v124_v16 = vadd.f32 %v118_v1, %v112_v11  ;;  %v101_v17 = vmul.f32 8.0, %v95_v6  ;;  %v102_v19 = vmul.f32 8.0, %v96_v7  ;;  %v97_v21 = vsub.f32 %v67_v33, %v91_v10  ;;  %v123_v33 = vld [vmem:[#allocation2 + $0x28] sm:$0xff] }
  0x1e   :  { %v113_v22 = vsel %vm261_vm2, %v99_v12, %v105_v60  ;;  %v114_v23 = vsel %vm261_vm2, %v100_v14, %v106_v61  ;;  %v168_v41 = vadd.f32 0.5, %v166_v34  ;;  %v143_v42 = vsel %vm141_vm5, 240.0, %v139_v39 }
  0x1f   :  { %130 = vst [vmem:[%s359_s1] sm:$0xff] %v124_v16  ;;  %v125_v26 = vadd.f32 %v119_v13, %v113_v22  ;;  %v126_v27 = vadd.f32 %v120_v15, %v114_v23  ;;  %v115_v28 = vsel %vm261_vm2, %v101_v17, %v107_v5  ;;  %v116_v29 = vsel %vm261_vm2, %v102_v19, %v108_v8  ;;  %v190_v17 = vld [vmem:[#allocation2 + $0x30] sm:$0xff]  ;;  %v191_v23 = vld [vmem:[#allocation2 + $0x38] sm:$0xff] }
  0x20   :  { %v127_v30 = vadd.f32 %v121_v18, %v115_v28  ;;  %v128_v31 = vadd.f32 %v122_v20, %v116_v29  ;;  %v103_v32 = vmul.f32 8.0, %v97_v21  ;;  %v147_v43 = vsel %vm145_vm6, 252.0, %v143_v42 }
  0x21   :  { %131 = vst [vmem:[%s359_s1 + $0x8] sm:$0xff] %v125_v26  ;;  %v156_v37 = vsel %vm140_vm1, 0.5, %v154_v38  ;;  %v170_v44 = vmul.f32 0.33333334, %v168_v41  ;;  %v167_v46 = vsub.f32 %v253_v9, %v147_v43  ;;  %v235_v47 = vmov 8.0  }
  0x22   :  { %132 = vst [vmem:[%s359_s1 + $0x10] sm:$0xff] %v126_v27  ;;  %v117_v35 = vsel %vm261_vm2, %v103_v32, %v109_v24  ;;  %v148_v48 = vsel %vm136_vm0, 4.0, %v235_v47  ;;  %v155_v49 = vsel %vm137_vm4, 0.25, %v234_v36  ;;  %v158_v52 = vsel %vm144_vm3, 1.0, %v156_v37 }
  0x23   :  { %133 = vst [vmem:[%s359_s1 + $0x18] sm:$0xff] %v127_v30  ;;  %v129_v40 = vadd.f32 %v123_v33, %v117_v35  ;;  %v172_v50 = vfloor.f32 %v170_v44  ;;  %v169_v51 = vadd.f32 0.5, %v167_v46  ;;  %v236_v53 = vmov 16.0  }
  0x24   :  { %134 = vst [vmem:[%s359_s1 + $0x20] sm:$0xff] %v128_v31  ;;  %v160_v54 = vsel %vm136_vm0, 32.0, %v236_v53  ;;  %v150_v55 = vsel %vm140_vm1, 2.0, %v148_v48  ;;  %v157_v57 = vsel %vm141_vm5, 0.5, %v155_v49  ;;  %v149_v59 = vsel %vm137_vm4, 4.0, %v235_v47 }
  0x25   :  { %135 = vst [vmem:[%s359_s1 + $0x28] sm:$0xff] %v129_v40  ;;  %v174_v56 = vadd.f32 0.5, %v172_v50  ;;  %v171_v58 = vmul.f32 0.33333334, %v169_v51  ;;  %v162_v60 = vsel %vm140_vm1, 64.0, %v160_v54  ;;  %v152_v63 = vsel %vm144_vm3, 1.0, %v150_v55 }
  0x26   :  { %v159_v0 = vsel %vm145_vm6, 1.0, %v157_v57  ;;  %v161_v1 = vsel %vm137_vm4, 32.0, %v236_v53  ;;  %v151_v4 = vsel %vm141_vm5, 2.0, %v149_v59  ;;  %v164_v6 = vsel %vm144_vm3, 128.0, %v162_v60 }
  0x27   :  { %v176_v61 = vmul.f32 %v174_v56, %v158_v52  ;;  %v173_v62 = vfloor.f32 %v171_v58  ;;  %v163_v8 = vsel %vm141_vm5, 64.0, %v161_v1  ;;  %v153_v11 = vsel %vm145_vm6, 1.0, %v151_v4 }
  0x28   :  { %v165_v15 = vsel %vm145_vm6, 128.0, %v163_v8 }
  0x29   :  { %v178_v3 = vfloor.f32 %v176_v61  ;;  %v175_v5 = vadd.f32 0.5, %v173_v62 }
  0x2b   :  { %v180_v7 = vmul.f32 %v178_v3, %v152_v63  ;;  %v177_v10 = vmul.f32 %v175_v5, %v159_v0  ;;  %v186_v13 = vmul.f32 %v178_v3, %v164_v6 }
  0x2d   :  { %v182_v12 = vsub.f32 %v172_v50, %v180_v7  ;;  %v179_v14 = vfloor.f32 %v177_v10 }
  0x2f   :  { %v184_v16 = vmul.f32 %v182_v12, %v164_v6  ;;  %v181_v18 = vmul.f32 %v179_v14, %v153_v11  ;;  %v187_v20 = vmul.f32 %v179_v14, %v165_v15 }
  0x31   :  { %v188_v2 = vsel %vm261_vm2, %v184_v16, %v186_v13  ;;  %v183_v19 = vsub.f32 %v173_v62, %v181_v18 }
  0x32   :  { %v192_v21 = vadd.f32 %v190_v17, %v188_v2 }
  0x33   :  { %v185_v22 = vmul.f32 %v183_v19, %v165_v15 }
  0x34   :  { %194 = vst [vmem:[%s359_s1 + $0x30] sm:$0xff] %v192_v21 }
  0x35   :  { %v189_v24 = vsel %vm261_vm2, %v185_v22, %v187_v20 }
  0x36   :  { %v193_v9 = vadd.f32 %v191_v23, %v189_v24 }
  0x38   :  { %195 = vst [vmem:[%s359_s1 + $0x38] sm:$0xff] %v193_v9 }
  0x39   :  { %200 = vsyncpa [#allocation3], 1 }

</bundles_post_ra>
